<compile_context>
chip_gen: v5e
topology: v5e:2x2
jax: 0.10.0
libtpu: 0.0.40
codegen_flags: <defaults>
</compile_context>

<pallas_src>
import numpy as np
import jax
import jax.numpy as jnp
from jax import lax
from jax.experimental import pallas as pl
from jax.experimental.pallas import tpu as pltpu

NUM_QUBITS = 4
DIM = 1 << NUM_QUBITS      # 16 basis states
PACKED = 2 * DIM           # 32 = [real rows ; imag rows]


# ----------------------------- Pallas kernel ---------------------------------
def quantum_kernel(xT_ref, ueff_ref, zs2_ref, outT_ref):
    """One batch tile, batch on the lane axis.

    xT_ref   : (4, TB)   angles
    ueff_ref : (32, 16)  [Re(U@S); Im(U@S)],  S = diag((-i)^popcount(b))
    zs2_ref  : (4, 32)   [Z^T | Z^T]  (folds re^2 + im^2 and the Z projection into one matmul)
    outT_ref : (4, TB)   PauliZ expectation values
    """
    xT = xT_ref[...]                       # (4, TB)
    half = xT * 0.5
    c = jnp.cos(half)                      # EUP (free slot)
    s = jnp.sin(half)

    tb = xT.shape[1]
    # Basis index b on the sublane axis; M[b, :] = prod_j (cos_j if bit_j(b)==0 else sin_j).
    b_idx = lax.broadcasted_iota(jnp.int32, (DIM, tb), 0)
    M = jnp.ones((DIM, tb), jnp.float32)
    for j in range(NUM_QUBITS):            # static, unrolled VPU loop
        bit = ((b_idx >> (NUM_QUBITS - 1 - j)) & 1).astype(jnp.float32)
        M = M * (c[j:j + 1, :] * (1.0 - bit) + s[j:j + 1, :] * bit)

    # Single packed real matmul: O = [o_re^T ; o_im^T]  (32, TB)
    O = jnp.dot(ueff_ref[...], M, preferred_element_type=jnp.float32)
    # out^T = [Z^T|Z^T] @ (O*O)  ==  Z^T @ (|re|^2 + |im|^2)   (4, TB), lane-dense store
    outT_ref[...] = jnp.dot(zs2_ref[...], O * O, preferred_element_type=jnp.float32)


def quantum_layer_pallas(xT, ueff_T, zs2T, *, tb=1024):
    """xT: (4, B) float32 angles (batch on lanes). Returns (4, B) float32 expectations."""
    B = xT.shape[1]
    if B <= tb:
        tb_eff = B                                   # single block == full array
        x_in = xT
    else:
        assert tb % 128 == 0, "batch tile must be a multiple of 128 lanes"
        tb_eff = tb
        pad = (-B) % tb_eff
        x_in = jnp.pad(xT, ((0, 0), (0, pad))) if pad else xT
    Bp = x_in.shape[1]
    grid = (Bp // tb_eff,)

    outT = pl.pallas_call(
        quantum_kernel,
        out_shape=jax.ShapeDtypeStruct((NUM_QUBITS, Bp), jnp.float32),
        grid_spec=pltpu.PrefetchScalarGridSpec(
            num_scalar_prefetch=0,
            grid=grid,
            in_specs=[
                pl.BlockSpec((NUM_QUBITS, tb_eff), lambda i: (0, i)),  # batch-tiled angles
                pl.BlockSpec((PACKED, DIM), lambda i: (0, 0)),         # resident packed unitary
                pl.BlockSpec((NUM_QUBITS, PACKED), lambda i: (0, 0)),  # resident Z-sign table
            ],
            out_specs=pl.BlockSpec((NUM_QUBITS, tb_eff), lambda i: (0, i)),
        ),
        compiler_params=pltpu.CompilerParams(
            dimension_semantics=("parallel",),       # independent batch tiles -> megacore on v7x
        ),
    )(x_in, ueff_T, zs2T)
    return outT[:, :B]


def quantum_layer_forward(x, ueff_T, zs2T, *, tb=1024):
    """Full forward: x (B, 4) angles -> (B, 4) float32 PauliZ expectations."""
    xT = jnp.transpose(x.astype(jnp.float32))        # (4, B): batch -> lanes (layout plumbing)
    outT = quantum_layer_pallas(xT, ueff_T, zs2T, tb=tb)
    return jnp.transpose(outT)                       # (B, 4), matches torch.stack([...]).float()


# --------------------- host-side constant construction ------------------------
def _rx(theta):
    c = np.cos(theta / 2.0)
    s = np.sin(theta / 2.0)
    return np.array([[c, -1j * s], [-1j * s, c]], dtype=np.complex128)


def _op_on_wire(gate2, wire, n=NUM_QUBITS):
    """Lift a 2x2 gate on `wire` to 2^n x 2^n (wire 0 = MSB, PennyLane order)."""
    mat = np.eye(1, dtype=np.complex128)
    for w in range(n):
        mat = np.kron(mat, gate2 if w == wire else np.eye(2, dtype=np.complex128))
    return mat


def _cnot(control, target, n=NUM_QUBITS):
    dim = 1 << n
    mat = np.zeros((dim, dim), dtype=np.complex128)
    for b in range(dim):
        cbit = (b >> (n - 1 - control)) & 1
        nb = b ^ (1 << (n - 1 - target)) if cbit else b
        mat[nb, b] = 1.0
    return mat


def build_entangler_unitary(weights_np):
    """BasicEntanglerLayers(weights): per layer RX(w[l,i]) on each wire, then CNOT ring."""
    n_layers = weights_np.shape[0]
    U = np.eye(DIM, dtype=np.complex128)
    for l in range(n_layers):
        layer = np.eye(DIM, dtype=np.complex128)
        for w in range(NUM_QUBITS):
            layer = _op_on_wire(_rx(weights_np[l, w]), w) @ layer
        for w in range(NUM_QUBITS):                 # CNOT ring (0,1),(1,2),(2,3),(3,0)
            layer = _cnot(w, (w + 1) % NUM_QUBITS) @ layer
        U = layer @ U
    return U


def build_z_signs():
    """zs[b, i] = <b| Z_i |b>, wire 0 = MSB."""
    zs = np.zeros((DIM, NUM_QUBITS), dtype=np.float64)
    for b in range(DIM):
        for i in range(NUM_QUBITS):
            zs[b, i] = 1.0 if ((b >> (NUM_QUBITS - 1 - i)) & 1) == 0 else -1.0
    return zs


def pack_constants(weights_np):
    """Done ONCE per weight update (not per forward): pack U and Z table for the kernel.

    The embedded product state is psi[b] = (-i)^popcount(b) * M[b] with real M, so the phase
    diagonal S is folded into the unitary: V = U @ S, and the kernel only needs real matmuls.
    """
    # TODO(synk): weights arrive as concrete numpy; traced/trainable weights would need a JAX rewrite.
    U = build_entangler_unitary(np.asarray(weights_np, dtype=np.float64))
    sign = np.array([(-1j) ** bin(b).count("1") for b in range(DIM)], dtype=np.complex128)
    V = U * sign[None, :]                                              # == U @ diag(sign)
    ueff_T = np.concatenate([V.real, V.imag], axis=0).astype(np.float32)   # (32, 16)
    zsT = build_z_signs().T                                            # (4, 16)
    zs2T = np.concatenate([zsT, zsT], axis=1).astype(np.float32)       # (4, 32)
    return jnp.asarray(ueff_T), jnp.asarray(zs2T)


# ------------------------------ reference -------------------------------------
def reference_numpy(x_np, weights_np):
    """Exact float64/complex128 statevector simulation of the same circuit."""
    x = np.asarray(x_np, dtype=np.float64)
    B = x.shape[0]
    psi = np.ones((B, 1), dtype=np.complex128)
    for j in range(NUM_QUBITS):
        c = np.cos(x[:, j] / 2.0)
        s = np.sin(x[:, j] / 2.0)
        qj = np.stack([c, -1j * s], axis=1)                # RX(x_j)|0>
        psi = (psi[:, :, None] * qj[:, None, :]).reshape(B, -1)
    U = build_entangler_unitary(np.asarray(weights_np, dtype=np.float64))
    psi_out = psi @ U.T
    probs = np.abs(psi_out) ** 2
    return (probs @ build_z_signs()).astype(np.float32)


# ------------------------------- main -----------------------------------------
if __name__ == "__main__":
    key = jax.random.PRNGKey(0)
    kx, kw, kx2 = jax.random.split(key, 3)

    weights = np.asarray(jax.random.normal(kw, (3, NUM_QUBITS)), np.float64)  # nn.Parameter randn(3,4)
    ueff_T, zs2T = pack_constants(weights)   # host-side packing, once per weight update

    # Small batch matching the module's per-sample loop (single block, no tiling).
    B = 8
    x = jax.random.normal(kx, (B, NUM_QUBITS), dtype=jnp.float32)
    out = jax.block_until_ready(quantum_layer_forward(x, ueff_T, zs2T))
    assert out.shape == (B, NUM_QUBITS) and out.dtype == jnp.float32
    np.testing.assert_allclose(np.asarray(out), reference_numpy(np.asarray(x), weights),
                               atol=5e-5, rtol=5e-5)

    # A larger ragged batch to exercise the tiled / padded / megacore-parallel path.
    B2 = 300
    x2 = jax.random.normal(kx2, (B2, NUM_QUBITS), dtype=jnp.float32)
    out2 = jax.block_until_ready(quantum_layer_forward(x2, ueff_T, zs2T, tb=128))
    assert out2.shape == (B2, NUM_QUBITS) and out2.dtype == jnp.float32
    np.testing.assert_allclose(np.asarray(out2), reference_numpy(np.asarray(x2), weights),
                               atol=5e-5, rtol=5e-5)

    print("KERNEL_OK")
</pallas_src>

<mosaic_0001>
module attributes {stable_mosaic.version = 11 : i64} {
  func.func @quantum_kernel(%arg0: i32, %arg1: memref<4x8xf32, #tpu.memory_space<vmem>>, %arg2: memref<32x16xf32, #tpu.memory_space<vmem>>, %arg3: memref<4x32xf32, #tpu.memory_space<vmem>>, %arg4: memref<4x8xf32, #tpu.memory_space<vmem>>) attributes {dimension_semantics = [#tpu.dimension_semantics<parallel>], iteration_bounds = array<i64: 1>, scalar_prefetch = 0 : i64, scratch_operands = 0 : i64, tpu.core_type = #tpu.core_type<tc>, window_params = [{transform_indices = @transform_0, window_bounds = array<i64: 4, 8>}, {pipeline_mode = #tpu.pipeline_mode<synchronous>, transform_indices = @transform_1, window_bounds = array<i64: 32, 16>}, {pipeline_mode = #tpu.pipeline_mode<synchronous>, transform_indices = @transform_2, window_bounds = array<i64: 4, 32>}, {transform_indices = @transform_3, window_bounds = array<i64: 4, 8>}]} {
    %c0 = arith.constant 0 : index
    %c0_0 = arith.constant 0 : index
    %0 = vector.load %arg1[%c0, %c0_0] : memref<4x8xf32, #tpu.memory_space<vmem>>, vector<4x8xf32>
    %cst = arith.constant 5.000000e-01 : f32
    %1 = vector.broadcast %cst : f32 to vector<4x8xf32>
    %2 = arith.mulf %0, %1 : vector<4x8xf32>
    %3 = math.cos %2 : vector<4x8xf32>
    %4 = math.sin %2 : vector<4x8xf32>
    %5 = tpu.iota {dimensions = array<i32: 0>} : vector<16x8xi32>
    %cst_1 = arith.constant 1.000000e+00 : f32
    %6 = vector.broadcast %cst_1 : f32 to vector<16x8xf32>
    %c3_i32 = arith.constant 3 : i32
    %7 = vector.broadcast %c3_i32 : i32 to vector<16x8xi32>
    %8 = arith.shrsi %5, %7 : vector<16x8xi32>
    %c1_i32 = arith.constant 1 : i32
    %9 = vector.broadcast %c1_i32 : i32 to vector<16x8xi32>
    %10 = arith.andi %8, %9 : vector<16x8xi32>
    %11 = arith.sitofp %10 : vector<16x8xi32> to vector<16x8xf32>
    %12 = vector.extract_strided_slice %3 {offsets = [0, 0], sizes = [1, 8], strides = [1, 1]} : vector<4x8xf32> to vector<1x8xf32>
    %cst_2 = arith.constant 1.000000e+00 : f32
    %13 = vector.broadcast %cst_2 : f32 to vector<16x8xf32>
    %14 = arith.subf %13, %11 : vector<16x8xf32>
    %15 = vector.broadcast %12 : vector<1x8xf32> to vector<16x8xf32>
    %16 = arith.mulf %15, %14 : vector<16x8xf32>
    %17 = vector.extract_strided_slice %4 {offsets = [0, 0], sizes = [1, 8], strides = [1, 1]} : vector<4x8xf32> to vector<1x8xf32>
    %18 = vector.broadcast %17 : vector<1x8xf32> to vector<16x8xf32>
    %19 = arith.mulf %18, %11 : vector<16x8xf32>
    %20 = arith.addf %16, %19 : vector<16x8xf32>
    %21 = arith.mulf %6, %20 : vector<16x8xf32>
    %c2_i32 = arith.constant 2 : i32
    %22 = vector.broadcast %c2_i32 : i32 to vector<16x8xi32>
    %23 = arith.shrsi %5, %22 : vector<16x8xi32>
    %c1_i32_3 = arith.constant 1 : i32
    %24 = vector.broadcast %c1_i32_3 : i32 to vector<16x8xi32>
    %25 = arith.andi %23, %24 : vector<16x8xi32>
    %26 = arith.sitofp %25 : vector<16x8xi32> to vector<16x8xf32>
    %27 = vector.extract_strided_slice %3 {offsets = [1, 0], sizes = [1, 8], strides = [1, 1]} : vector<4x8xf32> to vector<1x8xf32>
    %cst_4 = arith.constant 1.000000e+00 : f32
    %28 = vector.broadcast %cst_4 : f32 to vector<16x8xf32>
    %29 = arith.subf %28, %26 : vector<16x8xf32>
    %30 = vector.broadcast %27 : vector<1x8xf32> to vector<16x8xf32>
    %31 = arith.mulf %30, %29 : vector<16x8xf32>
    %32 = vector.extract_strided_slice %4 {offsets = [1, 0], sizes = [1, 8], strides = [1, 1]} : vector<4x8xf32> to vector<1x8xf32>
    %33 = vector.broadcast %32 : vector<1x8xf32> to vector<16x8xf32>
    %34 = arith.mulf %33, %26 : vector<16x8xf32>
    %35 = arith.addf %31, %34 : vector<16x8xf32>
    %36 = arith.mulf %21, %35 : vector<16x8xf32>
    %c1_i32_5 = arith.constant 1 : i32
    %37 = vector.broadcast %c1_i32_5 : i32 to vector<16x8xi32>
    %38 = arith.shrsi %5, %37 : vector<16x8xi32>
    %c1_i32_6 = arith.constant 1 : i32
    %39 = vector.broadcast %c1_i32_6 : i32 to vector<16x8xi32>
    %40 = arith.andi %38, %39 : vector<16x8xi32>
    %41 = arith.sitofp %40 : vector<16x8xi32> to vector<16x8xf32>
    %42 = vector.extract_strided_slice %3 {offsets = [2, 0], sizes = [1, 8], strides = [1, 1]} : vector<4x8xf32> to vector<1x8xf32>
    %cst_7 = arith.constant 1.000000e+00 : f32
    %43 = vector.broadcast %cst_7 : f32 to vector<16x8xf32>
    %44 = arith.subf %43, %41 : vector<16x8xf32>
    %45 = vector.broadcast %42 : vector<1x8xf32> to vector<16x8xf32>
    %46 = arith.mulf %45, %44 : vector<16x8xf32>
    %47 = vector.extract_strided_slice %4 {offsets = [2, 0], sizes = [1, 8], strides = [1, 1]} : vector<4x8xf32> to vector<1x8xf32>
    %48 = vector.broadcast %47 : vector<1x8xf32> to vector<16x8xf32>
    %49 = arith.mulf %48, %41 : vector<16x8xf32>
    %50 = arith.addf %46, %49 : vector<16x8xf32>
    %51 = arith.mulf %36, %50 : vector<16x8xf32>
    %c0_i32 = arith.constant 0 : i32
    %52 = vector.broadcast %c0_i32 : i32 to vector<16x8xi32>
    %53 = arith.shrsi %5, %52 : vector<16x8xi32>
    %c1_i32_8 = arith.constant 1 : i32
    %54 = vector.broadcast %c1_i32_8 : i32 to vector<16x8xi32>
    %55 = arith.andi %53, %54 : vector<16x8xi32>
    %56 = arith.sitofp %55 : vector<16x8xi32> to vector<16x8xf32>
    %57 = vector.extract_strided_slice %3 {offsets = [3, 0], sizes = [1, 8], strides = [1, 1]} : vector<4x8xf32> to vector<1x8xf32>
    %cst_9 = arith.constant 1.000000e+00 : f32
    %58 = vector.broadcast %cst_9 : f32 to vector<16x8xf32>
    %59 = arith.subf %58, %56 : vector<16x8xf32>
    %60 = vector.broadcast %57 : vector<1x8xf32> to vector<16x8xf32>
    %61 = arith.mulf %60, %59 : vector<16x8xf32>
    %62 = vector.extract_strided_slice %4 {offsets = [3, 0], sizes = [1, 8], strides = [1, 1]} : vector<4x8xf32> to vector<1x8xf32>
    %63 = vector.broadcast %62 : vector<1x8xf32> to vector<16x8xf32>
    %64 = arith.mulf %63, %56 : vector<16x8xf32>
    %65 = arith.addf %61, %64 : vector<16x8xf32>
    %66 = arith.mulf %51, %65 : vector<16x8xf32>
    %c0_10 = arith.constant 0 : index
    %c0_11 = arith.constant 0 : index
    %67 = vector.load %arg2[%c0_10, %c0_11] : memref<32x16xf32, #tpu.memory_space<vmem>>, vector<32x16xf32>
    %cst_12 = arith.constant dense<0.000000e+00> : vector<32x8xf32>
    %68 = tpu.matmul %67, %66, %cst_12 {dimension_numbers = #tpu.dot_dimension_numbers<[1], [0], [0], [1], [0, 0, 1, 1], [], []>} : vector<32x16xf32>, vector<16x8xf32>, vector<32x8xf32> -> vector<32x8xf32>
    %c0_13 = arith.constant 0 : index
    %c0_14 = arith.constant 0 : index
    %69 = vector.load %arg3[%c0_13, %c0_14] : memref<4x32xf32, #tpu.memory_space<vmem>>, vector<4x32xf32>
    %70 = arith.mulf %68, %68 : vector<32x8xf32>
    %cst_15 = arith.constant dense<0.000000e+00> : vector<4x8xf32>
    %71 = tpu.matmul %69, %70, %cst_15 {dimension_numbers = #tpu.dot_dimension_numbers<[1], [0], [0], [1], [0, 0, 1, 1], [], []>} : vector<4x32xf32>, vector<32x8xf32>, vector<4x8xf32> -> vector<4x8xf32>
    %c0_16 = arith.constant 0 : index
    %c0_17 = arith.constant 0 : index
    %72 = vector.load %arg4[%c0_16, %c0_17] : memref<4x8xf32, #tpu.memory_space<vmem>>, vector<4x8xf32>
    tpu.vector_store %arg4[%c0_16, %c0_17], %71 {strides = array<i32>} : memref<4x8xf32, #tpu.memory_space<vmem>>, vector<4x8xf32>,
    return
  }
  func.func @transform_0(%arg0: i32) -> (i32, i32) {
    %c0_i32 = arith.constant 0 : i32
    %c0_i32_0 = arith.constant 0 : i32
    return %c0_i32, %arg0 : i32, i32
  }
  func.func @transform_1(%arg0: i32) -> (i32, i32) {
    %c0_i32 = arith.constant 0 : i32
    %c0_i32_0 = arith.constant 0 : i32
    %c0_i32_1 = arith.constant 0 : i32
    return %c0_i32, %c0_i32_0 : i32, i32
  }
  func.func @transform_2(%arg0: i32) -> (i32, i32) {
    %c0_i32 = arith.constant 0 : i32
    %c0_i32_0 = arith.constant 0 : i32
    %c0_i32_1 = arith.constant 0 : i32
    return %c0_i32, %c0_i32_0 : i32, i32
  }
  func.func @transform_3(%arg0: i32) -> (i32, i32) {
    %c0_i32 = arith.constant 0 : i32
    %c0_i32_0 = arith.constant 0 : i32
    return %c0_i32, %arg0 : i32, i32
  }
}

</mosaic_0001>

<bundles_post_ra>
// kernel: tpu_custom_call.1
= control target key start
LH: loop header
LB: loop body
LE: loop exit
PB: predicated region body
PF: predicated region fallthrough
CT: control target
= control target key end

     0   :  { %s641_s0 = inlined_call_operand.vmem [shape: f32[4,8], index: 0, kind: input, shape index: {}]   ;;  %s642_s1 = inlined_call_operand.vmem [shape: f32[32,16], index: 1, kind: input, shape index: {}]   ;;  %s643_s2 = inlined_call_operand.vmem [shape: f32[4,32], index: 2, kind: input, shape index: {}]   ;;  %s644_s3 = inlined_call_operand.hbm [shape: f32[4,8], index: 3, kind: output, shape index: {}]  }
   0x1   :  { %v15_v0 = vld [vmem:[%s641_s0] sm:$0xf] }
   0x2   :  { %v570_v1 = vmul.f32 0.5, %v15_v0 }
   0x3   :  { %8 = vsyncpa [#allocation3], 0  ;;  %v539_v13 = vmov 683565275   ;;  %v540_v15 = vmov 2475754826  }
   0x4   :  { %v20_v2 = vand.u32 2139095040, %v570_v1  ;;  %v17_v4 = vand.u32 2147483647, %v570_v1  ;;  %v541_v17 = vmov 2131351028   ;;  %vm19_vm12 = vcmp.lt.s32.totalorder %v570_v1, 0 }
   0x5   :  { %v542_v19 = vmov 2102212464   ;;  %v543_v21 = vmov 920167782   ;;  %v544_v27 = vmov 1326507024  }
   0x6   :  { %v21_v3 = vshrl.u32 %v20_v2, 23  ;;  %v24_v7 = vand.u32 8388607, %v17_v4  ;;  %v545_v2 = vmov 0   ;;  %vm18_vm13 = vcmp.le.f32.partialorder %v17_v4, 0.7853982 }
   0x7   :  { %s481_s26 = sshll.u32 %s644_s3, 4  ;;  %s482_s26 = int_to_ptr.hbm [resolvable:$true] %s481_s26 }
   0x8   :  { %v490_v5 = vadd.s32 4294967169, %v21_v3  ;;  %v25_v10 = vor.u32 8388608, %v24_v7 }
   0xa   :  { %v27_v6 = vadd.s32 1, %v490_v5  ;;  %v579_v29 = vshll.u32 %v25_v10, 8 }
   0xc   :  { %vm28_vm0 = vcmp.gt.s32.totalorder %v27_v6, 0  ;;  %v66_v41 = vand.u32 65535, %v579_v29  ;;  %v67_v42 = vshrl.u32 %v579_v29, 16 }
   0xd   :  { %v29_v8 = vsel %vm28_vm0, %v27_v6, 0 }
   0xe   :  { %v31_v9 = vand.u32 31, %v29_v8  ;;  %v576_v11 = vshrl.u32 %v29_v8, 5 }
  0x10   :  { %v32_v12 = vsub.s32 32, %v31_v9  ;;  %v34_v14 = vshll.u32 %v539_v13, %v31_v9  ;;  %v37_v16 = vshll.u32 %v540_v15, %v31_v9  ;;  %v40_v18 = vshll.u32 %v541_v17, %v31_v9 }
  0x11   :  { %v43_v20 = vshll.u32 %v542_v19, %v31_v9  ;;  %v46_v22 = vshll.u32 %v543_v21, %v31_v9  ;;  %vm49_vm1 = vcmp.lt.s32.totalorder %v576_v11, 1  ;;  %vm52_vm2 = vcmp.lt.s32.totalorder %v576_v11, 4 }
  0x12   :  { %v35_v23 = vshrl.u32 %v540_v15, %v32_v12  ;;  %v38_v24 = vshrl.u32 %v541_v17, %v32_v12  ;;  %v41_v25 = vshrl.u32 %v542_v19, %v32_v12  ;;  %v44_v26 = vshrl.u32 %v543_v21, %v32_v12 }
  0x13   :  { %v47_v28 = vshrl.u32 %v544_v27, %v32_v12  ;;  %vm51_vm3 = vcmp.lt.s32.totalorder %v576_v11, 3  ;;  %vm50_vm4 = vcmp.lt.s32.totalorder %v576_v11, 2  ;;  %v33_v49 = vshrl.u32 %v539_v13, %v32_v12 }
  0x14   :  { %v36_v30 = vor.u32 %v35_v23, %v34_v14  ;;  %v39_v31 = vor.u32 %v38_v24, %v37_v16  ;;  %v42_v32 = vor.u32 %v41_v25, %v40_v18  ;;  %v45_v33 = vor.u32 %v44_v26, %v43_v20 }
  0x15   :  { %v48_v34 = vor.u32 %v47_v28, %v46_v22 }
  0x16   :  { %v57_v35 = vsel %vm49_vm1, %v36_v30, %v39_v31  ;;  %v61_v36 = vsel %vm49_vm1, %v39_v31, %v42_v32  ;;  %v58_v37 = vsel %vm52_vm2, %v45_v33, 920167782  ;;  %v53_v62 = vsel %vm49_vm1, %v33_v49, %v36_v30 }
  0x17   :  { %v62_v38 = vsel %vm52_vm2, %v48_v34, 1326507024  ;;  %v59_v39 = vsel %vm51_vm3, %v42_v32, %v58_v37  ;;  %v54_v0 = vsel %vm52_vm2, %v42_v32, 2102212464 }
  0x18   :  { %v63_v40 = vsel %vm51_vm3, %v45_v33, %v62_v38  ;;  %v60_v43 = vsel %vm50_vm4, %v57_v35, %v59_v39  ;;  %v55_v13 = vsel %vm51_vm3, %v39_v31, %v54_v0 }
  0x19   :  { %v64_v44 = vsel %vm50_vm4, %v61_v36, %v63_v40  ;;  %v90_v47 = vand.u32 65535, %v60_v43  ;;  %v91_v48 = vshrl.u32 %v60_v43, 16  ;;  %v56_v21 = vsel %vm50_vm4, %v53_v62, %v55_v13 }
  0x1a   :  { %v68_v45 = vand.u32 65535, %v64_v44  ;;  %v69_v46 = vshrl.u32 %v64_v44, 16  ;;  %v110_v25 = vmul.u32 %v579_v29, %v56_v21  ;;  %vm160_vm4 = vweird.f32 %v570_v1 }
  0x1b   :  { %v92_v53 = vmul.u32 %v90_v47, %v66_v41  ;;  %v93_v54 = vmul.u32 %v91_v48, %v66_v41  ;;  %v94_v55 = vmul.u32 %v90_v47, %v67_v42  ;;  %v95_v59 = vmul.u32 %v91_v48, %v67_v42 }
  0x1c   :  { %v70_v50 = vmul.u32 %v68_v45, %v66_v41  ;;  %v71_v51 = vmul.u32 %v69_v46, %v66_v41  ;;  %v72_v52 = vmul.u32 %v68_v45, %v67_v42  ;;  %v73_v56 = vmul.u32 %v69_v46, %v67_v42 }
  0x1d   :  { %v96_v60 = vshll.u32 %v93_v54, 16  ;;  %v98_v61 = vshll.u32 %v94_v55, 16  ;;  %v97_v10 = vshrl.u32 %v93_v54, 16  ;;  %v99_v17 = vshrl.u32 %v94_v55, 16 }
  0x1e   :  { %v74_v57 = vshll.u32 %v71_v51, 16  ;;  %v76_v58 = vshll.u32 %v72_v52, 16  ;;  %v75_v6 = vshrl.u32 %v71_v51, 16  ;;  %v77_v14 = vshrl.u32 %v72_v52, 16 }
  0x1f   :  { %vm100_vm6 = vc.u32 %v92_v53, %v96_v60  ;;  %v102_v5 = vadd.s32 %v96_v60, %v92_v53  ;;  %v326_v48 = vlaneseq }
  0x20   :  { %vm78_vm5 = vc.u32 %v70_v50, %v74_v57  ;;  %v80_v63 = vadd.s32 %v74_v57, %v70_v50  ;;  %v101_v8 = vsel %vm100_vm6, 1, %v545_v2  ;;  %vm448_vm6 = vcmask 261120  }
  0x21   :  { %v79_v3 = vsel %vm78_vm5, 1, %v545_v2  ;;  %v103_v12 = vadd.s32 %v101_v8, %v95_v59  ;;  %vm104_vm8 = vc.u32 %v102_v5, %v98_v61  ;;  %v106_v20 = vadd.s32 %v102_v5, %v98_v61 }
  0x22   :  { %v81_v7 = vadd.s32 %v79_v3, %v73_v56  ;;  %vm82_vm7 = vc.u32 %v80_v63, %v76_v58  ;;  %v105_v16 = vsel %vm104_vm8, 1, %v545_v2  ;;  %v327_v52 = vshrl.u32 %v326_v48, 7 }
  0x23   :  { %v83_v9 = vsel %vm82_vm7, 1, %v545_v2  ;;  %v107_v18 = vadd.s32 %v105_v16, %v103_v12  ;;  %vm401_vm5 = vcmask 130048   ;;  %vm472_vm7 = vcmask 60416  }
  0x24   :  { %v85_v15 = vadd.s32 %v83_v9, %v81_v7  ;;  %v328_v57 = vadd.s32 8, %v327_v52  ;;  %v329_v7 = vshra.s32 %v327_v52, 3  ;;  %v345_v8 = vshra.s32 %v327_v52, 2 }
  0x25   :  { %v108_v22 = vadd.s32 %v107_v18, %v97_v10  ;;  %v363_v9 = vshra.s32 %v327_v52, 1 }
  0x26   :  { %v86_v19 = vadd.s32 %v85_v15, %v75_v6  ;;  %v330_v2 = vshra.s32 %v328_v57, 3  ;;  %v346_v3 = vshra.s32 %v328_v57, 2  ;;  %v364_v4 = vshra.s32 %v328_v57, 1 }
  0x27   :  { %v109_v24 = vadd.s32 %v108_v22, %v99_v17  ;;  %v347_v21 = vand.u32 1, %v345_v8  ;;  %v615_v22 = vand.u32 1, %v363_v9 }
  0x28   :  { %v87_v23 = vadd.s32 %v86_v19, %v77_v14  ;;  %v332_v14 = vand.u32 1, %v330_v2  ;;  %v348_v15 = vand.u32 1, %v346_v3  ;;  %v366_v18 = vand.u32 1, %v364_v4 }
  0x29   :  { %v113_v26 = vadd.s32 1, %v109_v24  ;;  %v382_v19 = vand.u32 1, %v328_v57 }
  0x2a   :  { %vm112_vm9 = vc.u32 %v87_v23, %v106_v20  ;;  %v111_v11 = vadd.s32 %v106_v20, %v87_v23  ;;  %v331_v20 = vand.u32 1, %v329_v7 }
  0x2b   :  { %v114_v27 = vsel %vm112_vm9, %v113_v26, %v109_v24  ;;  %v334_v26 = vcvt.s32.f32 %v332_v14 }
  0x2c   :  { %v115_v28 = vadd.s32 %v114_v27, %v110_v25  ;;  %v381_v25 = vand.u32 1, %v327_v52  ;;  %v350_v27 = vcvt.s32.f32 %v348_v15 }
  0x2e   :  { %v116_v30 = vadd.s32 536870912, %v115_v28 }
  0x30   :  { %v117_v31 = vshrl.u32 %v116_v30, 30 }
  0x32   :  { %v118_v32 = vshll.u32 %v117_v31, 30  ;;  %v141_v50 = vsub.s32 4, %v117_v31 }
  0x34   :  { %v119_v33 = vsub.s32 %v115_v28, %v118_v32  ;;  %v142_v54 = vsel %vm19_vm12, %v141_v50, %v117_v31  ;;  %v368_v31 = vcvt.s32.f32 %v366_v18  ;;  %v384_v32 = vcvt.s32.f32 %v382_v19 }
  0x35   :  { %v144_v58 = vsel %vm18_vm13, 0, %v142_v54 }
  0x36   :  { %vm120_vm10 = vcmp.lt.s32.totalorder %v119_v33, 0  ;;  %v121_v34 = vsub.s32 0, %v119_v33  ;;  %v161_v63 = vand.u32 3, %v144_v58  ;;  %v315_v0 = vadd.s32 3, %v144_v58 }
  0x38   :  { %v122_v35 = vsel %vm120_vm10, %v121_v34, %v119_v33  ;;  %vm162_vm14 = vcmp.lt.s32.totalorder %v161_v63, 2  ;;  %v316_v13 = vand.u32 3, %v315_v0  ;;  %vm163_vm15 = vcmp.eq.s32.totalorder %v161_v63, 0 }
  0x39   :  { %v123_v36 = vclz %v122_v35  ;;  %vm166_vm0 = vcmp.eq.s32.totalorder %v161_v63, 2  ;;  %v349_v34 = vcvt.s32.f32 %v347_v21  ;;  %v367_v35 = vcvt.s32.f32 %v615_v22 }
  0x3a   :  { %vm318_vm1 = vcmp.eq.s32.totalorder %v316_v13, 0  ;;  %vm321_vm2 = vcmp.eq.s32.totalorder %v316_v13, 2  ;;  %vm317_vm3 = vcmp.lt.s32.totalorder %v316_v13, 2 }
  0x3b   :  { %v491_v37 = vadd.s32 4294967294, %v123_v36  ;;  %v369_v50 = vsub.f32 1.0, %v367_v35 }
  0x3d   :  { %vm492_vm11 = vcmp.lt.s32.totalorder %v491_v37, 0 }
  0x3e   :  { %v126_v38 = vsel %vm492_vm11, 0, %v491_v37 }
  0x3f   :  { %v127_v39 = vsub.s32 32, %v126_v38  ;;  %v128_v40 = vshll.u32 %v119_v33, %v126_v38  ;;  %v131_v41 = vsub.s32 4294967266, %v126_v38  ;;  %v333_v33 = vcvt.s32.f32 %v331_v20 }
  0x40   :  { %v383_v38 = vcvt.s32.f32 %v381_v25 }
  0x41   :  { %v129_v29 = vshrl.u32 %v111_v11, %v127_v39  ;;  %v132_v42 = vadd.s32 127, %v131_v41  ;;  %v336_v39 = vsub.f32 1.0, %v334_v26 }
  0x43   :  { %v130_v43 = vor.u32 %v129_v29, %v128_v40  ;;  %v133_v44 = vshll.u32 %v132_v42, 23  ;;  %v352_v40 = vsub.f32 1.0, %v350_v27  ;;  %v370_v42 = vsub.f32 1.0, %v368_v31 }
  0x45   :  { %v134_v45 = vor.u32 4788187, %v133_v44  ;;  %v137_v46 = vcvt.s32.f32 %v130_v43  ;;  %v386_v43 = vsub.f32 1.0, %v384_v32 }
  0x47   :  { %v135_v47 = vand.u32 2147483647, %v134_v45 }
  0x49   :  { %v138_v49 = vmul.f32 %v137_v46, %v135_v47  ;;  %v335_v46 = vsub.f32 1.0, %v333_v33  ;;  %v351_v47 = vsub.f32 1.0, %v349_v34 }
  0x4b   :  { %v139_v51 = vxor.u32 2147483648, %v138_v49 }
  0x4d   :  { %v140_v53 = vsel %vm19_vm12, %v139_v51, %v138_v49  ;;  %v385_v51 = vsub.f32 1.0, %v383_v38 }
  0x4e   :  { %v143_v55 = vsel %vm18_vm13, %v570_v1, %v140_v53 }
  0x4f   :  { %v145_v56 = vmul.f32 %v143_v55, %v143_v55 }
  0x51   :  { %v146_v59 = vmul.f32 -0.001358992, %v145_v56  ;;  %v153_v60 = vmul.f32 -0.00019511016, %v145_v56 }
  0x53   :  { %v147_v61 = vadd.f32 0.041655596, %v146_v59  ;;  %v154_v62 = vadd.f32 0.008332121, %v153_v60 }
  0x55   :  { %v148_v5 = vmul.f32 %v147_v61, %v145_v56  ;;  %v155_v6 = vmul.f32 %v154_v62, %v145_v56 }
  0x57   :  { %v149_v10 = vadd.f32 -0.4999988, %v148_v5  ;;  %v156_v12 = vadd.f32 -0.16666654, %v155_v6 }
  0x59   :  { %v150_v16 = vmul.f32 %v149_v10, %v145_v56  ;;  %v157_v17 = vmul.f32 %v156_v12, %v145_v56 }
  0x5b   :  { %v151_v23 = vadd.f32 1.0, %v150_v16  ;;  %v158_v24 = vadd.f32 1.0, %v157_v17 }
  0x5d   :  { %v159_v28 = vmul.f32 %v158_v24, %v143_v55  ;;  %v167_v30 = vxor.u32 2147483648, %v151_v23 }
  0x5f   :  { %v164_v36 = vxor.u32 2147483648, %v159_v28  ;;  %v168_v37 = vsel %vm166_vm0, %v167_v30, %v159_v28  ;;  %v323_v11 = vsel %vm321_vm2, %v167_v30, %v159_v28  ;;  %v400_v28 = vld [vmem:[%s642_s1 + $0x18] sm:$0xff]  ;;  %v397_v30 = vld [vmem:[%s642_s1] sm:$0xff] }
  0x61   :  { %v165_v41 = vsel %vm163_vm15, %v151_v23, %v164_v36  ;;  %v320_v29 = vsel %vm318_vm1, %v151_v23, %v164_v36 }
  0x62   :  { %v169_v44 = vsel %vm162_vm14, %v165_v41, %v168_v37  ;;  %v324_v45 = vsel %vm317_vm3, %v320_v29, %v323_v11 }
  0x63   :  { %v170_v48 = vsel %vm160_vm4, nan, %v169_v44  ;;  %v325_v49 = vsel %vm160_vm4, nan, %v324_v45 }
  0x64   :  { %v337_v52 = vperm.slane %v170_v48, 0  ;;  %v340_v1 = vperm.slane %v325_v49, 0  ;;  %v353_v53 = vperm.slane %v170_v48, 1  ;;  %v356_v54 = vperm.slane %v325_v49, 1 }
  0x65   :  { %v371_v55 = vperm.slane %v170_v48, 2  ;;  %v374_v56 = vperm.slane %v325_v49, 2  ;;  %v387_v57 = vperm.slane %v170_v48, 3  ;;  %v390_v58 = vperm.slane %v325_v49, 3 }
  0x66   :  { %v339_v59 = vmul.f32 %v337_v52, %v336_v39  ;;  %v342_v60 = vmul.f32 %v340_v1, %v334_v26  ;;  %v355_v61 = vmul.f32 %v353_v53, %v352_v40  ;;  %v358_v62 = vmul.f32 %v356_v54, %v350_v27  ;;  %v398_v27 = vld [vmem:[%s642_s1 + $0x8] sm:$0xff]  ;;  %v443_v39 = vld [vmem:[%s643_s2] sm:$0xf] }
  0x67   :  { %v373_v63 = vmul.f32 %v371_v55, %v370_v42  ;;  %v376_v0 = vmul.f32 %v374_v56, %v368_v31  ;;  %v389_v2 = vmul.f32 %v387_v57, %v386_v43  ;;  %v392_v3 = vmul.f32 %v390_v58, %v384_v32  ;;  %v399_v31 = vld [vmem:[%s642_s1 + $0x10] sm:$0xff]  ;;  %s546_s1 = smov [#allocation2]  }
  0x68   :  { %v344_v5 = vadd.f32 %v342_v60, %v339_v59  ;;  %v360_v6 = vadd.f32 %v358_v62, %v355_v61  ;;  %v338_v4 = vmul.f32 %v337_v52, %v335_v46  ;;  %v341_v7 = vmul.f32 %v340_v1, %v333_v33  ;;  %s479_s23 = sshll.u32 %s546_s1, 4  ;;  %s480_s23 = int_to_ptr.vmem [resolvable:$true] %s479_s23 }
  0x69   :  { %v378_v8 = vadd.f32 %v376_v0, %v373_v63  ;;  %v394_v9 = vadd.f32 %v392_v3, %v389_v2  ;;  %v354_v10 = vmul.f32 %v353_v53, %v351_v47  ;;  %v357_v12 = vmul.f32 %v356_v54, %v349_v34 }
  0x6a   :  { %v362_v13 = vmul.f32 %v360_v6, %v344_v5  ;;  %v343_v14 = vadd.f32 %v341_v7, %v338_v4  ;;  %v372_v15 = vmul.f32 %v371_v55, %v369_v50  ;;  %v375_v16 = vmul.f32 %v374_v56, %v367_v35 }
  0x6b   :  { %v359_v17 = vadd.f32 %v357_v12, %v354_v10  ;;  %v388_v18 = vmul.f32 %v387_v57, %v385_v51  ;;  %v391_v19 = vmul.f32 %v390_v58, %v383_v38 }
  0x6c   :  { %v380_v20 = vmul.f32 %v378_v8, %v362_v13  ;;  %v377_v21 = vadd.f32 %v375_v16, %v372_v15 }
  0x6d   :  { %v361_v22 = vmul.f32 %v359_v17, %v343_v14  ;;  %v393_v23 = vadd.f32 %v391_v19, %v388_v18 }
  0x6e   :  { %v396_v24 = vmul.f32 %v394_v9, %v380_v20 }
  0x6f   :  { %v379_v25 = vmul.f32 %v377_v21, %v361_v22 }
  0x70   :  { %501 = vmatpush.msra.mxu2 %v396_v24  ;;  %502 = vmatpush.msra.mxu3 %v396_v24 }
  0x71   :  { %v395_v26 = vmul.f32 %v393_v23, %v379_v25  ;;  %428 = vmatpush.msra.mxu0 %v396_v24 }
  0x73   :  { %503 = vmatpush.msra.mxu2 %v395_v26  ;;  %504 = vmatpush.msra.mxu3 %v395_v26 }
  0x74   :  { %497 = vmatmul.msk.f32.vlgmr.msra.gmra.mxu2 %vm401_vm5, %v398_v27  ;;  %499 = vmatmul.msk.f32.vlgmr.msra.gmra.mxu3 %vm401_vm5, %v400_v28 }
  0x75   :  { %429 = vmatpush.msra.mxu0 %v395_v26 }
  0x76   :  { %496 = vmatmul.msk.f32.vlgmr.msra.gmra.mxu0 %vm401_vm5, %v397_v30 }
  0x7c   :  { %498 = vmatmul.msk.f32.gmra.mxu2 %vm401_vm5, %v399_v31 }
  0xf3   :  { %v431_v36 = vpop.f32.mrf.mxu0 }
  0xf4   :  { %v444_v38 = vmul.f32 %v431_v36, %v431_v36 }
  0xf7   :  { %v434_v32 = vpop.f32.mrf.mxu2  ;;  %v440_v33 = vpop.f32.mrf.mxu3 }
  0xf8   :  { %v447_v34 = vmul.f32 %v440_v33, %v440_v33  ;;  %v445_v11 = vmul.f32 %v434_v32, %v434_v32 }
  0xfa   :  { %464 = vmatpush.msra.mxu1 %v447_v34 }
  0xff   :  { %v437_v35 = vpop.f32.mrf.mxu2 }
 0x100   :  { %v446_v37 = vmul.f32 %v437_v35, %v437_v35 }
 0x102   :  { %465 = vmatpush.msra.mxu1 %v446_v37 }
 0x104   :  { %466 = vmatpush.msra.mxu1 %v445_v11 }
 0x106   :  { %467 = vmatpush.msra.mxu1 %v444_v38 }
 0x107   :  { %500 = vmatmul.msk.f32.vlgmr.msra.gmra.mxu1 %vm448_vm6, %v443_v39 }
 0x184   :  { %v469_v40 = vpop.f32.mrf.mxu1 }
 0x185   :  { %473 = vst.msk [vmem:[#allocation2] sm:$0xf] %vm472_vm7, %v469_v40 }
 0x186   :  { %484 = dma.vmem_to_hbm [thread:$0]  %s480_s23, 64, %s482_s26, [#allocation3]  }
 0x187   :  { %537 = dma.done.wait [#allocation3], 64  }
 0x188   :  { %538 = vsyncadd [#allocation3], 4294967232 }
 0x189   :  { %489 = vsyncpa [#allocation3], 1 }

</bundles_post_ra>
